<compile_context>
chip_gen: v6e
topology: v6e:2x2x1
jax: 0.10.0
libtpu: 0.0.40
codegen_flags: <defaults>
</compile_context>

<pallas_src>
import functools

import jax
import jax.numpy as jnp
from jax.experimental import pallas as pl
from jax.experimental.pallas import tpu as pltpu


def _round_up(v, m):
    return ((v + m - 1) // m) * m


# ---------------- Pallas kernels ----------------

def _reparam_kernel(mu_ref, rho_ref, eps_ref, w_ref):
    # weight = mu + eps * softplus(rho); numerically-stable softplus.
    rho = rho_ref[...]
    sigma = jnp.maximum(rho, 0.0) + jnp.log1p(jnp.exp(-jnp.abs(rho)))
    w_ref[...] = (mu_ref[...] + eps_ref[...] * sigma).astype(w_ref.dtype)


def _conv_mm_kernel(a_ref, w_ref, b_ref, o_ref):
    # a_ref: (tm, tk) bf16 im2col patches
    # w_ref: (tk, tn) bf16 sampled weights
    # b_ref: (1, tn)  f32 sampled bias
    # o_ref: (tm, tn) f32 output tile; resident across the K axis, so it is
    #        used directly as the accumulator (no scratch, no final copy).
    k = pl.program_id(2)

    @pl.when(k == 0)
    def _():
        # fold bias into the accumulator init (once per (i, j) tile)
        o_ref[...] = jnp.broadcast_to(b_ref[...], o_ref.shape)

    o_ref[...] += jnp.dot(a_ref[...], w_ref[...],
                          preferred_element_type=jnp.float32)


# ---------------- wrappers ----------------

def reparam(mu2d, rho2d, eps2d, out_dtype=jnp.float32):
    """Elementwise weight = mu + eps * softplus(rho) on a 2-D parameter slab."""
    R, C = mu2d.shape
    out_shape = jax.ShapeDtypeStruct((R, C), out_dtype)
    # Row-tiled path: keep each f32 input block <= ~1 MiB so the double-
    # buffered footprint stays far below v7x's scoped VMEM.  Fall back to a
    # single full-array block for small/odd shapes (always legal).
    if R % 8 == 0 and R > 8:
        tr = R
        for cand in (512, 256, 128, 64, 32, 16, 8):
            if R % cand == 0 and cand * C * 4 <= (1 << 20):
                tr = cand
                break
        if tr < R:
            spec = pl.BlockSpec((tr, C), lambda i: (i, 0))
            return pl.pallas_call(
                _reparam_kernel,
                out_shape=out_shape,
                grid=(R // tr,),
                in_specs=[spec, spec, spec],
                out_specs=spec,
                compiler_params=pltpu.CompilerParams(
                    dimension_semantics=("parallel",)),
            )(mu2d, rho2d, eps2d)
    return pl.pallas_call(_reparam_kernel, out_shape=out_shape)(mu2d, rho2d, eps2d)


def _conv_matmul(A, Wmat, bias_row, tm, tn, tk):
    """A[Mp,Kp](bf16) @ Wmat[Kp,OCp](bf16) + bias_row[1,OCp](f32) -> f32[Mp,OCp]."""
    Mp, Kp = A.shape
    Kp2, OCp = Wmat.shape
    assert Kp == Kp2 and Mp % tm == 0 and Kp % tk == 0 and OCp % tn == 0, (
        (Mp, Kp, OCp), (tm, tn, tk))
    grid = (Mp // tm, OCp // tn, Kp // tk)
    return pl.pallas_call(
        _conv_mm_kernel,
        out_shape=jax.ShapeDtypeStruct((Mp, OCp), jnp.float32),
        grid=grid,
        in_specs=[
            pl.BlockSpec((tm, tk), lambda i, j, k: (i, k)),   # im2col patches
            pl.BlockSpec((tk, tn), lambda i, j, k: (k, j)),   # sampled weights
            pl.BlockSpec((1, tn), lambda i, j, k: (0, j)),    # sampled bias
        ],
        out_specs=pl.BlockSpec((tm, tn), lambda i, j, k: (i, j)),
        compiler_params=pltpu.CompilerParams(
            dimension_semantics=("parallel", "parallel", "arbitrary"),
            vmem_limit_bytes=32 * 1024 * 1024),
    )(A, Wmat, bias_row)


def _pick_tiles(M, K, OC):
    Mp128 = _round_up(M, 128)
    tm = min(512, Mp128)
    # v7x shards the parallel axes across 2 TensorCores: make sure the M axis
    # has at least 2 blocks whenever there is enough work to split.
    if Mp128 > 128 and Mp128 // tm < 2:
        tm = max(128, (Mp128 // 2 // 128) * 128)
    tn = min(512, _round_up(OC, 128))   # >=256 fills the v6e/v7x 256x256 MXU
    tk = min(512, _round_up(K, 128))
    return tm, tn, tk


@functools.partial(jax.jit, static_argnames=("stride", "padding", "dilation"))
def bbb_conv2d(x, W_mu, W_rho, b_mu, b_rho, W_eps, b_eps,
               stride=1, padding=1, dilation=1):
    """Forward of BBBConv2d with sample=True (training-mode sampling path)."""
    N, C, H, W = x.shape
    OC, _, KH, KW = W_mu.shape
    K = C * KH * KW

    OH = (H + 2 * padding - dilation * (KH - 1) - 1) // stride + 1
    OW = (W + 2 * padding - dilation * (KW - 1) - 1) // stride + 1
    M = N * OH * OW

    tm, tn, tk = _pick_tiles(M, K, OC)
    Mp, Kp, OCp = _round_up(M, tm), _round_up(K, tk), _round_up(OC, tn)

    # --- sample weights in native (OC, K) layout; one bf16 transpose + pad ---
    Wnat = reparam(W_mu.reshape(OC, K), W_rho.reshape(OC, K),
                   W_eps.reshape(OC, K), out_dtype=jnp.bfloat16)     # (OC, K)
    Wmat = jnp.pad(Wnat.T, ((0, Kp - K), (0, OCp - OC)))             # (Kp, OCp)

    bias = reparam(b_mu.reshape(1, OC), b_rho.reshape(1, OC),
                   b_eps.reshape(1, OC), out_dtype=jnp.float32)
    bias_row = jnp.pad(bias, ((0, 0), (0, OCp - OC)))                # (1, OCp)

    # --- im2col in NHWC (K = C*KH*KW lane-minor), bf16; pads fuse under jit ---
    # TODO(synk): implicit GEMM (kh*kw grid axis indexing the padded NHWC input
    # directly) would avoid materializing the KH*KW-x-larger A in HBM.
    xn = jnp.transpose(x, (0, 2, 3, 1)).astype(jnp.bfloat16)         # NHWC
    xp = jnp.pad(xn, ((0, 0), (padding, padding), (padding, padding), (0, 0)))
    cols = []
    for kh in range(KH):
        for kw in range(KW):
            h0, w0 = kh * dilation, kw * dilation
            cols.append(xp[:, h0:h0 + stride * OH:stride,
                           w0:w0 + stride * OW:stride, :])
    patches = jnp.stack(cols, axis=-1)                 # (N, OH, OW, C, KH*KW)
    A = patches.reshape(M, K)
    A = jnp.pad(A, ((0, Mp - M), (0, Kp - K)))         # single fused pad (jit)

    out = _conv_matmul(A, Wmat, bias_row, tm, tn, tk)                # (Mp, OCp)

    # slice + reshape + NCHW transpose fuse into one XLA op under jit.
    # (Kept f32/NCHW to match the PyTorch F.conv2d output convention.)
    return out[:M, :OC].reshape(N, OH, OW, OC).transpose(0, 3, 1, 2)

    # TODO(synk): kl_loss()/KL() is not part of the conv forward; not here.


# ---------------- demo / self-check ----------------

if __name__ == "__main__":
    key = jax.random.PRNGKey(0)
    k = jax.random.split(key, 7)

    # small shapes consistent with the module: batch=2, C_in=4, spatial=16
    N, C, H, W = 2, 4, 16, 16
    OC, KH, KW = 8, 3, 3
    stride, padding, dilation = 1, 1, 1

    x = jax.random.normal(k[0], (N, C, H, W), jnp.float32)

    # reset_parameters(): W_mu ~ N(0, 0.1), W_rho ~ N(-3, 0.1); same for bias.
    W_mu = 0.1 * jax.random.normal(k[1], (OC, C, KH, KW), jnp.float32)
    W_rho = -3.0 + 0.1 * jax.random.normal(k[2], (OC, C, KH, KW), jnp.float32)
    b_mu = 0.1 * jax.random.normal(k[3], (OC,), jnp.float32)
    b_rho = -3.0 + 0.1 * jax.random.normal(k[4], (OC,), jnp.float32)

    # forward-pass sampling noise eps ~ N(0, 2)
    W_eps = 2.0 * jax.random.normal(k[5], (OC, C, KH, KW), jnp.float32)
    b_eps = 2.0 * jax.random.normal(k[6], (OC,), jnp.float32)

    y = bbb_conv2d(x, W_mu, W_rho, b_mu, b_rho, W_eps, b_eps,
                   stride=stride, padding=padding, dilation=dilation)
    jax.block_until_ready(y)

    # reference: f32 lax conv with the same sampled weights (kernel uses bf16
    # operands with f32 accumulation -> relaxed tolerance).
    W_sigma = jnp.log1p(jnp.exp(W_rho))
    weight = W_mu + W_eps * W_sigma
    b_sigma = jnp.log1p(jnp.exp(b_rho))
    bias = b_mu + b_eps * b_sigma
    ref = jax.lax.conv_general_dilated(
        x, weight, (stride, stride),
        [(padding, padding), (padding, padding)],
        rhs_dilation=(dilation, dilation),
        dimension_numbers=("NCHW", "OIHW", "NCHW"),
    ) + bias[None, :, None, None]

    assert y.shape == (N, OC, H, W), y.shape
    assert jnp.allclose(y, ref, atol=5e-2, rtol=5e-2), "mismatch vs reference conv"
    print("KERNEL_OK")
</pallas_src>

<mosaic_0001>
module attributes {stable_mosaic.version = 11 : i64} {
  func.func @_reparam_kernel(%arg0: memref<8x36xf32, #tpu.memory_space<vmem>>, %arg1: memref<8x36xf32, #tpu.memory_space<vmem>>, %arg2: memref<8x36xf32, #tpu.memory_space<vmem>>, %arg3: memref<8x36xbf16, #tpu.memory_space<vmem>>) attributes {dimension_semantics = [], scalar_prefetch = 0 : i64, scratch_operands = 0 : i64, tpu.core_type = #tpu.core_type<tc>} {
    %c0 = arith.constant 0 : index
    %c0_0 = arith.constant 0 : index
    %0 = vector.load %arg1[%c0, %c0_0] : memref<8x36xf32, #tpu.memory_space<vmem>>, vector<8x36xf32>
    %cst = arith.constant 0.000000e+00 : f32
    %1 = vector.broadcast %cst : f32 to vector<8x36xf32>
    %2 = arith.maximumf %0, %1 : vector<8x36xf32>
    %3 = math.absf %0 : vector<8x36xf32>
    %cst_1 = arith.constant 0.000000e+00 : f32
    %4 = vector.broadcast %cst_1 : f32 to vector<8x36xf32>
    %5 = arith.subf %4, %3 : vector<8x36xf32>
    %6 = math.exp %5 : vector<8x36xf32>
    %7 = math.log1p %6 : vector<8x36xf32>
    %8 = arith.addf %2, %7 : vector<8x36xf32>
    %c0_2 = arith.constant 0 : index
    %c0_3 = arith.constant 0 : index
    %9 = vector.load %arg0[%c0_2, %c0_3] : memref<8x36xf32, #tpu.memory_space<vmem>>, vector<8x36xf32>
    %c0_4 = arith.constant 0 : index
    %c0_5 = arith.constant 0 : index
    %10 = vector.load %arg2[%c0_4, %c0_5] : memref<8x36xf32, #tpu.memory_space<vmem>>, vector<8x36xf32>
    %11 = arith.mulf %10, %8 : vector<8x36xf32>
    %12 = arith.addf %9, %11 : vector<8x36xf32>
    %13 = arith.truncf %12 : vector<8x36xf32> to vector<8x36xbf16>
    %c0_6 = arith.constant 0 : index
    %c0_7 = arith.constant 0 : index
    %14 = vector.load %arg3[%c0_6, %c0_7] : memref<8x36xbf16, #tpu.memory_space<vmem>>, vector<8x36xbf16>
    tpu.vector_store %arg3[%c0_6, %c0_7], %13 {strides = array<i32>} : memref<8x36xbf16, #tpu.memory_space<vmem>>, vector<8x36xbf16>,
    return
  }
}

module attributes {stable_mosaic.version = 11 : i64} {
  func.func @_reparam_kernel(%arg0: memref<1x8xf32, #tpu.memory_space<vmem>>, %arg1: memref<1x8xf32, #tpu.memory_space<vmem>>, %arg2: memref<1x8xf32, #tpu.memory_space<vmem>>, %arg3: memref<1x8xf32, #tpu.memory_space<vmem>>) attributes {dimension_semantics = [], scalar_prefetch = 0 : i64, scratch_operands = 0 : i64, tpu.core_type = #tpu.core_type<tc>} {
    %c0 = arith.constant 0 : index
    %c0_0 = arith.constant 0 : index
    %0 = vector.load %arg1[%c0, %c0_0] : memref<1x8xf32, #tpu.memory_space<vmem>>, vector<1x8xf32>
    %cst = arith.constant 0.000000e+00 : f32
    %1 = vector.broadcast %cst : f32 to vector<1x8xf32>
    %2 = arith.maximumf %0, %1 : vector<1x8xf32>
    %3 = math.absf %0 : vector<1x8xf32>
    %cst_1 = arith.constant 0.000000e+00 : f32
    %4 = vector.broadcast %cst_1 : f32 to vector<1x8xf32>
    %5 = arith.subf %4, %3 : vector<1x8xf32>
    %6 = math.exp %5 : vector<1x8xf32>
    %7 = math.log1p %6 : vector<1x8xf32>
    %8 = arith.addf %2, %7 : vector<1x8xf32>
    %c0_2 = arith.constant 0 : index
    %c0_3 = arith.constant 0 : index
    %9 = vector.load %arg0[%c0_2, %c0_3] : memref<1x8xf32, #tpu.memory_space<vmem>>, vector<1x8xf32>
    %c0_4 = arith.constant 0 : index
    %c0_5 = arith.constant 0 : index
    %10 = vector.load %arg2[%c0_4, %c0_5] : memref<1x8xf32, #tpu.memory_space<vmem>>, vector<1x8xf32>
    %11 = arith.mulf %10, %8 : vector<1x8xf32>
    %12 = arith.addf %9, %11 : vector<1x8xf32>
    %c0_6 = arith.constant 0 : index
    %c0_7 = arith.constant 0 : index
    %13 = vector.load %arg3[%c0_6, %c0_7] : memref<1x8xf32, #tpu.memory_space<vmem>>, vector<1x8xf32>
    tpu.vector_store %arg3[%c0_6, %c0_7], %12 {strides = array<i32>} : memref<1x8xf32, #tpu.memory_space<vmem>>, vector<1x8xf32>,
    return
  }
}

module attributes {stable_mosaic.version = 11 : i64} {
  func.func @_conv_mm_kernel(%arg0: i32, %arg1: i32, %arg2: i32, %arg3: memref<256x128xbf16, #tpu.memory_space<vmem>>, %arg4: memref<128x128xbf16, #tpu.memory_space<vmem>>, %arg5: memref<1x128xf32, #tpu.memory_space<vmem>>, %arg6: memref<256x128xf32, #tpu.memory_space<vmem>>) attributes {dimension_semantics = [#tpu.dimension_semantics<parallel>, #tpu.dimension_semantics<parallel>, #tpu.dimension_semantics<arbitrary>], iteration_bounds = array<i64: 2, 1, 1>, scalar_prefetch = 0 : i64, scratch_operands = 0 : i64, tpu.core_type = #tpu.core_type<tc>, window_params = [{transform_indices = @transform_0, window_bounds = array<i64: 256, 128>}, {transform_indices = @transform_1, window_bounds = array<i64: 128, 128>}, {transform_indices = @transform_2, window_bounds = array<i64: 1, 128>}, {transform_indices = @transform_3, window_bounds = array<i64: 256, 128>}]} {
    %c0_i32 = arith.constant 0 : i32
    %0 = arith.cmpi eq, %arg2, %c0_i32 : i32
    %1 = arith.extui %0 : i1 to i32
    %c0_i32_0 = arith.constant 0 : i32
    %2 = arith.cmpi ne, %1, %c0_i32_0 : i32
    scf.if %2 {
      %c0_8 = arith.constant 0 : index
      %c0_9 = arith.constant 0 : index
      %9 = vector.load %arg5[%c0_8, %c0_9] : memref<1x128xf32, #tpu.memory_space<vmem>>, vector<1x128xf32>
      %10 = vector.shape_cast %9 : vector<1x128xf32> to vector<1x128xf32>
      %11 = vector.broadcast %10 : vector<1x128xf32> to vector<256x128xf32>
      %c0_10 = arith.constant 0 : index
      %c0_11 = arith.constant 0 : index
      %12 = vector.load %arg6[%c0_10, %c0_11] : memref<256x128xf32, #tpu.memory_space<vmem>>, vector<256x128xf32>
      tpu.vector_store %arg6[%c0_10, %c0_11], %11 {strides = array<i32>} : memref<256x128xf32, #tpu.memory_space<vmem>>, vector<256x128xf32>,
    } else {
    }
    %c0 = arith.constant 0 : index
    %c0_1 = arith.constant 0 : index
    %3 = vector.load %arg6[%c0, %c0_1] : memref<256x128xf32, #tpu.memory_space<vmem>>, vector<256x128xf32>
    %c0_2 = arith.constant 0 : index
    %c0_3 = arith.constant 0 : index
    %4 = vector.load %arg3[%c0_2, %c0_3] : memref<256x128xbf16, #tpu.memory_space<vmem>>, vector<256x128xbf16>
    %c0_4 = arith.constant 0 : index
    %c0_5 = arith.constant 0 : index
    %5 = vector.load %arg4[%c0_4, %c0_5] : memref<128x128xbf16, #tpu.memory_space<vmem>>, vector<128x128xbf16>
    %cst = arith.constant dense<0.000000e+00> : vector<256x128xf32>
    %6 = tpu.matmul %4, %5, %cst {dimension_numbers = #tpu.dot_dimension_numbers<[1], [0], [0], [1], [0, 0, 1, 1], [], []>} : vector<256x128xbf16>, vector<128x128xbf16>, vector<256x128xf32> -> vector<256x128xf32>
    %7 = arith.addf %3, %6 : vector<256x128xf32>
    %c0_6 = arith.constant 0 : index
    %c0_7 = arith.constant 0 : index
    %8 = vector.load %arg6[%c0_6, %c0_7] : memref<256x128xf32, #tpu.memory_space<vmem>>, vector<256x128xf32>
    tpu.vector_store %arg6[%c0_6, %c0_7], %7 {strides = array<i32>} : memref<256x128xf32, #tpu.memory_space<vmem>>, vector<256x128xf32>,
    return
  }
  func.func @transform_0(%arg0: i32, %arg1: i32, %arg2: i32) -> (i32, i32) {
    %c0_i32 = arith.constant 0 : i32
    return %arg0, %arg2 : i32, i32
  }
  func.func @transform_1(%arg0: i32, %arg1: i32, %arg2: i32) -> (i32, i32) {
    %c0_i32 = arith.constant 0 : i32
    return %arg2, %arg1 : i32, i32
  }
  func.func @transform_2(%arg0: i32, %arg1: i32, %arg2: i32) -> (i32, i32) {
    %c0_i32 = arith.constant 0 : i32
    %c0_i32_0 = arith.constant 0 : i32
    return %c0_i32, %arg1 : i32, i32
  }
  func.func @transform_3(%arg0: i32, %arg1: i32, %arg2: i32) -> (i32, i32) {
    %c0_i32 = arith.constant 0 : i32
    return %arg0, %arg1 : i32, i32
  }
}

</mosaic_0001>

<bundles_post_ra>
// kernel: bbb_conv2d.4
= control target key start
LH: loop header
LB: loop body
LE: loop exit
PB: predicated region body
PF: predicated region fallthrough
CT: control target
= control target key end

     0   :  { %vm34_vm1 = vcmask 57344   ;;  %s76_s1 = inlined_call_operand.vmem [shape: f32[1,8], index: 1, kind: input, shape index: {}]   ;;  %s77_s2 = inlined_call_operand.vmem [shape: f32[1,8], index: 2, kind: input, shape index: {}]   ;;  %s78_s0 = inlined_call_operand.vmem [shape: f32[1,8], index: 0, kind: input, shape index: {}]   ;;  %s79_s3 = inlined_call_operand.vmem [shape: f32[1,8], index: 3, kind: output, shape index: {}]  }
   0x1   :  { %v14_v0 = vld [vmem:[%s76_s1] sm:$0x1] }
   0x2   :  { %v16_v1 = vand.u32 2147483647, %v14_v0  ;;  %v15_v11 = vmax.f32 %v14_v0, 0.0  ;;  %v31_v14 = vld [vmem:[%s77_s2] sm:$0x1] }
   0x3   :  { %v30_v16 = vld [vmem:[%s78_s0] sm:$0x1] }
   0x4   :  { %v17_v2 = vsub.f32 0.0, %v16_v1 }
   0x6   :  { %v18_v3 = vmul.f32 1.442695, %v17_v2 }
   0x8   :  { %40 = vpow2.f32 %v18_v3 }
  0x15   :  { %v41_v4 = vpop.eup %40 }
  0x16   :  { %v20_v5 = vadd.f32 1.0, %v41_v4  ;;  %v23_v6 = vmul.f32 -0.5, %v41_v4  ;;  %v26_v8 = vand.u32 2147483647, %v41_v4 }
  0x18   :  { %42 = vlog2.f32 %v20_v5  ;;  %v24_v7 = vadd.f32 1.0, %v23_v6  ;;  %vm27_vm0 = vcmp.lt.f32.partialorder %v26_v8, 0.0004427343 }
  0x1a   :  { %v25_v9 = vmul.f32 %v41_v4, %v24_v7 }
  0x25   :  { %v43_v10 = vpop.eup %42 }
  0x26   :  { %v22_v12 = vmul.f32 0.6931472, %v43_v10 }
  0x28   :  { %v28_v13 = vsel %vm27_vm0, %v25_v9, %v22_v12 }
  0x29   :  { %v29_v15 = vadd.f32 %v28_v13, %v15_v11 }
  0x2b   :  { %v32_v17 = vmul.f32 %v31_v14, %v29_v15 }
  0x2d   :  { %v33_v18 = vadd.f32 %v32_v17, %v30_v16 }
  0x2f   :  { %35 = vst.msk [vmem:[%s79_s3] sm:$0x1] %vm34_vm1, %v33_v18 }

// kernel: bbb_conv2d.3
= control target key start
LH: loop header
LB: loop body
LE: loop exit
PB: predicated region body
PF: predicated region fallthrough
CT: control target
= control target key end

     0   :  { %vm35_vm1 = vcmask 289792   ;;  %s77_s1 = inlined_call_operand.vmem [shape: f32[8,36], index: 1, kind: input, shape index: {}]   ;;  %s78_s2 = inlined_call_operand.vmem [shape: f32[8,36], index: 2, kind: input, shape index: {}]   ;;  %s79_s0 = inlined_call_operand.vmem [shape: f32[8,36], index: 0, kind: input, shape index: {}]   ;;  %s80_s3 = inlined_call_operand.vmem [shape: bf16[8,36], index: 3, kind: output, shape index: {}]  }
   0x1   :  { %v14_v0 = vld [vmem:[%s77_s1] sm:$0xff] }
   0x2   :  { %v16_v1 = vand.u32 2147483647, %v14_v0  ;;  %v15_v11 = vmax.f32 %v14_v0, 0.0  ;;  %v31_v14 = vld [vmem:[%s78_s2] sm:$0xff] }
   0x3   :  { %v30_v16 = vld [vmem:[%s79_s0] sm:$0xff] }
   0x4   :  { %v17_v2 = vsub.f32 0.0, %v16_v1 }
   0x6   :  { %v18_v3 = vmul.f32 1.442695, %v17_v2 }
   0x8   :  { %41 = vpow2.f32 %v18_v3 }
  0x15   :  { %v42_v4 = vpop.eup %41 }
  0x16   :  { %v20_v5 = vadd.f32 1.0, %v42_v4  ;;  %v23_v6 = vmul.f32 -0.5, %v42_v4  ;;  %v26_v8 = vand.u32 2147483647, %v42_v4 }
  0x18   :  { %43 = vlog2.f32 %v20_v5  ;;  %v24_v7 = vadd.f32 1.0, %v23_v6  ;;  %vm27_vm0 = vcmp.lt.f32.partialorder %v26_v8, 0.0004427343 }
  0x1a   :  { %v25_v9 = vmul.f32 %v42_v4, %v24_v7 }
  0x25   :  { %v44_v10 = vpop.eup %43 }
  0x26   :  { %v22_v12 = vmul.f32 0.6931472, %v44_v10 }
  0x28   :  { %v28_v13 = vsel %vm27_vm0, %v25_v9, %v22_v12 }
  0x29   :  { %v29_v15 = vadd.f32 %v28_v13, %v15_v11 }
  0x2b   :  { %v32_v17 = vmul.f32 %v31_v14, %v29_v15 }
  0x2d   :  { %v33_v18 = vadd.f32 %v32_v17, %v30_v16 }
  0x2f   :  { %v34_v19 = vpack.c.bf16 %v33_v18, %v33_v18 }
  0x31   :  { %36 = vst.msk [vmem:[%s80_s3] sm:$0xf] %vm35_vm1, %v34_v19 }

// kernel: bbb_conv2d.5
= control target key start
LH: loop header
LB: loop body
LE: loop exit
PB: predicated region body
PF: predicated region fallthrough
CT: control target
= control target key end

     0   :  { %s1081_s12 = smov 0   ;;  %s1083_s13 = smov 0   ;;  %s1231_s0 = inlined_call_operand.vmem [shape: bf16[512,128], index: 0, kind: input, shape index: {}]   ;;  %s1232_s1 = inlined_call_operand.vmem [shape: bf16[128,128], index: 1, kind: input, shape index: {}]   ;;  %s1233_s2 = inlined_call_operand.vmem [shape: f32[1,128], index: 2, kind: input, shape index: {}]   ;;  %s1234_s3 = inlined_call_operand.vmem [shape: f32[512,128], index: 3, kind: output, shape index: {}]  }
   0x1   :  { %s1085_s14 = smov 0  }
   0x2 LB: > { %s32_s15 = sadd.s32 1, %s1055_s13  ;;  %p869_p0 = scmp.ge.s32.totalorder %s1059_s14, 1  ;;  %s1059_s14 = sphi %s1085_s14, %s13_s14   ;;  %s1055_s13 = sphi %s1083_s13, %s1236_s13   ;;  %s1051_s12 = sphi %s1081_s12, %s1235_s12  }
   0x3   : > { %p34_p1 = scmp.ge.s32.totalorder %s32_s15, 2  ;;  %p188_p2 = scmp.lt.s32.totalorder %s1059_s14, 3 }
   0x5   : > { %s1238_s15 = smov (%p34_p1, %s32_s15), 0  ;;  %p189_p3 = pnand %p869_p0, %p188_p2 }
   0x6   : > { %s870_s18 = sshll.u32 (!%p189_p3), %s1051_s12, 5 }
   0x7   : > { %192 = sbr.rel (%p189_p3) target bundleno = 271 (0x10f), region = 32  ;;  %p230_p4 = scmp.lt.s32.totalorder (!%p189_p3), %s870_s18, 63 }
   0xc   : > { %v1013_v0 = vld [vmem:[%s1232_s1 + $0x38] sm:$0xff]   ;;  %v1014_v1 = vld [vmem:[%s1232_s1 + $0x30] sm:$0xff]   ;;  %s1240_s18 = smov (!%p230_p4, %s870_s18), 63  ;;  %v1015_v2 = vld [vmem:[%s1232_s1 + $0x28] sm:$0xff]  }
   0xd   : > { %925 = vmatprep.subr.bf16.mxu0 %v1013_v0  ;;  %973 = vmatprep.subr.bf16.mxu1 %v1013_v0  ;;  %s871_s23 = sshll.u32 %s1240_s18, 2  ;;  %v1016_v3 = vld [vmem:[%s1232_s1 + $0x20] sm:$0xff]   ;;  %v1017_v6 = vld [vmem:[%s1232_s1 + $0x18] sm:$0xff]   ;;  %v1018_v7 = vld [vmem:[%s1232_s1 + $0x10] sm:$0xff]   ;;  %s873_s10 = sshll.u32 %s1240_s18, 3 }
   0xe   : > { %926 = vmatpush3.bf16.msra.mxu0 %v1013_v0  ;;  %981 = vmatpush3.bf16.msra.mxu1 %v1013_v0  ;;  %s1114_s26 = scalar_lea.vmem %s1231_s0, %s871_s23  ;;  %v1019_v8 = vld [vmem:[%s1232_s1 + $0x8] sm:$0xff]   ;;  %v1020_v9 = vld [vmem:[%s1232_s1] sm:$0xff]   ;;  %s1156_s19 = scalar_lea.vmem %s1234_s3, %s873_s10 }
   0xf   : > { %927 = vmatprep.subr.bf16.mxu0 %v1014_v1  ;;  %974 = vmatprep.subr.bf16.mxu1 %v1014_v1  ;;  %v1021_v4 = vld [vmem:[%s1114_s26] sm:$0xff]   ;;  %v1023_v10 = vld [vmem:[%s1114_s26 + $0x8] sm:$0xff]   ;;  %v1025_v12 = vld [vmem:[%s1114_s26 + $0x10] sm:$0xff]  }
  0x10   : > { %v1022_v5 = vld [vmem:[%s1114_s26 + $0x40] sm:$0xff]   ;;  %941 = vmatprep.mubr.bf16.mxu0 %v1021_v4  ;;  %v1024_v11 = vld [vmem:[%s1114_s26 + $0x48] sm:$0xff]   ;;  %v1026_v13 = vld [vmem:[%s1114_s26 + $0x50] sm:$0xff]  }
  0x11   : > { %957 = vmatprep.mubr.bf16.mxu1 %v1022_v5  ;;  %v1027_v14 = vld [vmem:[%s1114_s26 + $0x18] sm:$0xff]   ;;  %v1029_v16 = vld [vmem:[%s1114_s26 + $0x20] sm:$0xff]   ;;  %v1031_v18 = vld [vmem:[%s1114_s26 + $0x28] sm:$0xff]  }
  0x12   : > { %928 = vmatpush3.bf16.msra.mxu0 %v1014_v1  ;;  %982 = vmatpush3.bf16.msra.mxu1 %v1014_v1  ;;  %v1028_v15 = vld [vmem:[%s1114_s26 + $0x58] sm:$0xff]   ;;  %v1030_v17 = vld [vmem:[%s1114_s26 + $0x60] sm:$0xff]   ;;  %v1032_v19 = vld [vmem:[%s1114_s26 + $0x68] sm:$0xff]  }
  0x13   : > { %929 = vmatprep.subr.bf16.mxu0 %v1015_v2  ;;  %975 = vmatprep.subr.bf16.mxu1 %v1015_v2  ;;  %v1033_v20 = vld [vmem:[%s1114_s26 + $0x30] sm:$0xff]   ;;  %v1035_v22 = vld [vmem:[%s1114_s26 + $0x38] sm:$0xff]   ;;  %v1151_v24 = vld [vmem:[%s1233_s2] ss:$0 sm:$0xff] }
  0x14   : > { %v1034_v21 = vld [vmem:[%s1114_s26 + $0x70] sm:$0xff]   ;;  %v1036_v23 = vld [vmem:[%s1114_s26 + $0x78] sm:$0xff]  }
  0x16   : > { %930 = vmatpush3.bf16.msra.mxu0 %v1015_v2  ;;  %983 = vmatpush3.bf16.msra.mxu1 %v1015_v2 }
  0x17   : > { %931 = vmatprep.subr.bf16.mxu0 %v1016_v3  ;;  %976 = vmatprep.subr.bf16.mxu1 %v1016_v3 }
  0x1a   : > { %932 = vmatpush3.bf16.msra.mxu0 %v1016_v3  ;;  %984 = vmatpush3.bf16.msra.mxu1 %v1016_v3 }
  0x1b   : > { %933 = vmatprep.subr.bf16.mxu0 %v1017_v6  ;;  %977 = vmatprep.subr.bf16.mxu1 %v1017_v6 }
  0x1e   : > { %934 = vmatpush3.bf16.msra.mxu0 %v1017_v6  ;;  %985 = vmatpush3.bf16.msra.mxu1 %v1017_v6 }
  0x1f   : > { %935 = vmatprep.subr.bf16.mxu0 %v1018_v7  ;;  %978 = vmatprep.subr.bf16.mxu1 %v1018_v7 }
  0x22   : > { %936 = vmatpush3.bf16.msra.mxu0 %v1018_v7  ;;  %986 = vmatpush3.bf16.msra.mxu1 %v1018_v7 }
  0x23   : > { %937 = vmatprep.subr.bf16.mxu0 %v1019_v8  ;;  %979 = vmatprep.subr.bf16.mxu1 %v1019_v8 }
  0x26   : > { %938 = vmatpush3.bf16.msra.mxu0 %v1019_v8  ;;  %987 = vmatpush3.bf16.msra.mxu1 %v1019_v8 }
  0x27   : > { %939 = vmatprep.subr.bf16.mxu0 %v1020_v9  ;;  %980 = vmatprep.subr.bf16.mxu1 %v1020_v9 }
  0x2a   : > { %940 = vmatpush3.bf16.msra.mxu0 %v1020_v9  ;;  %988 = vmatpush3.bf16.msra.mxu1 %v1020_v9 }
  0x2d   : > { %942 = vmatmul.mubr.bf16.vlgmr.msra.gmra.mxu0 %v1023_v10  ;;  %958 = vmatmul.mubr.bf16.vlgmr.msra.gmra.mxu1 %v1024_v11 }
  0x2e   : > { %945 = vmatprep.mubr.bf16.mxu0 %v1025_v12  ;;  %961 = vmatprep.mubr.bf16.mxu1 %v1026_v13 }
  0x35   : > { %946 = vmatmul.mubr.bf16.gmra.mxu0 %v1027_v14  ;;  %962 = vmatmul.mubr.bf16.gmra.mxu1 %v1028_v15 }
  0x36   : > { %949 = vmatprep.mubr.bf16.mxu0 %v1029_v16  ;;  %965 = vmatprep.mubr.bf16.mxu1 %v1030_v17 }
  0x3d   : > { %950 = vmatmul.mubr.bf16.gmra.mxu0 %v1031_v18  ;;  %966 = vmatmul.mubr.bf16.gmra.mxu1 %v1032_v19 }
  0x3e   : > { %953 = vmatprep.mubr.bf16.mxu0 %v1033_v20  ;;  %969 = vmatprep.mubr.bf16.mxu1 %v1034_v21 }
  0x45   : > { %954 = vmatmul.mubr.bf16.gmra.mxu0 %v1035_v22  ;;  %970 = vmatmul.mubr.bf16.gmra.mxu1 %v1036_v23 }
  0xed   : > { %v943_v25 = vpop.f32.mrf.mxu0  ;;  %v959_v26 = vpop.f32.mrf.mxu1 }
  0xee   : > { %v690_v27 = vadd.f32 %v943_v25, %v1151_v24  ;;  %v706_v28 = vadd.f32 %v959_v26, %v1151_v24 }
  0xef   : > { %v561_v29 = vpop.f32.mrf.mxu0  ;;  %v625_v30 = vpop.f32.mrf.mxu1 }
  0xf0   : > { %722 = vst [vmem:[%s1156_s19 + $0x10] sm:$0xff] %v690_v27  ;;  %738 = vst [vmem:[%s1156_s19 + $0x90] sm:$0xff] %v706_v28  ;;  %v688_v31 = vadd.f32 %v1151_v24, %v561_v29  ;;  %v704_v32 = vadd.f32 %v1151_v24, %v625_v30 }
  0xf1   : > { %v944_v33 = vpop.f32.mrf.mxu0  ;;  %v960_v34 = vpop.f32.mrf.mxu1 }
  0xf2   : > { %720 = vst [vmem:[%s1156_s19] sm:$0xff] %v688_v31  ;;  %736 = vst [vmem:[%s1156_s19 + $0x80] sm:$0xff] %v704_v32  ;;  %v691_v35 = vadd.f32 %v944_v33, %v1151_v24  ;;  %v707_v36 = vadd.f32 %v960_v34, %v1151_v24 }
  0xf3   : > { %v564_v37 = vpop.f32.mrf.mxu0  ;;  %v628_v38 = vpop.f32.mrf.mxu1 }
  0xf4   : > { %723 = vst [vmem:[%s1156_s19 + $0x18] sm:$0xff] %v691_v35  ;;  %739 = vst [vmem:[%s1156_s19 + $0x98] sm:$0xff] %v707_v36  ;;  %v689_v39 = vadd.f32 %v1151_v24, %v564_v37  ;;  %v705_v40 = vadd.f32 %v1151_v24, %v628_v38 }
  0xf5   : > { %v947_v41 = vpop.f32.mrf.mxu0  ;;  %v963_v42 = vpop.f32.mrf.mxu1 }
  0xf6   : > { %721 = vst [vmem:[%s1156_s19 + $0x8] sm:$0xff] %v689_v39  ;;  %737 = vst [vmem:[%s1156_s19 + $0x88] sm:$0xff] %v705_v40  ;;  %v694_v43 = vadd.f32 %v947_v41, %v1151_v24  ;;  %v710_v44 = vadd.f32 %v963_v42, %v1151_v24 }
  0xf7   : > { %v577_v45 = vpop.f32.mrf.mxu0  ;;  %v641_v46 = vpop.f32.mrf.mxu1 }
  0xf8   : > { %726 = vst [vmem:[%s1156_s19 + $0x30] sm:$0xff] %v694_v43  ;;  %742 = vst [vmem:[%s1156_s19 + $0xb0] sm:$0xff] %v710_v44  ;;  %v692_v47 = vadd.f32 %v1151_v24, %v577_v45  ;;  %v708_v48 = vadd.f32 %v1151_v24, %v641_v46 }
  0xf9   : > { %v948_v49 = vpop.f32.mrf.mxu0  ;;  %v964_v50 = vpop.f32.mrf.mxu1 }
  0xfa   : > { %724 = vst [vmem:[%s1156_s19 + $0x20] sm:$0xff] %v692_v47  ;;  %740 = vst [vmem:[%s1156_s19 + $0xa0] sm:$0xff] %v708_v48  ;;  %v695_v51 = vadd.f32 %v948_v49, %v1151_v24  ;;  %v711_v52 = vadd.f32 %v964_v50, %v1151_v24 }
  0xfb   : > { %v580_v53 = vpop.f32.mrf.mxu0  ;;  %v644_v54 = vpop.f32.mrf.mxu1 }
  0xfc   : > { %727 = vst [vmem:[%s1156_s19 + $0x38] sm:$0xff] %v695_v51  ;;  %743 = vst [vmem:[%s1156_s19 + $0xb8] sm:$0xff] %v711_v52  ;;  %v693_v55 = vadd.f32 %v1151_v24, %v580_v53  ;;  %v709_v56 = vadd.f32 %v1151_v24, %v644_v54 }
  0xfd   : > { %v951_v57 = vpop.f32.mrf.mxu0  ;;  %v967_v58 = vpop.f32.mrf.mxu1 }
  0xfe   : > { %725 = vst [vmem:[%s1156_s19 + $0x28] sm:$0xff] %v693_v55  ;;  %741 = vst [vmem:[%s1156_s19 + $0xa8] sm:$0xff] %v709_v56  ;;  %v698_v59 = vadd.f32 %v951_v57, %v1151_v24  ;;  %v714_v60 = vadd.f32 %v967_v58, %v1151_v24 }
  0xff   : > { %v593_v61 = vpop.f32.mrf.mxu0  ;;  %v657_v62 = vpop.f32.mrf.mxu1 }
 0x100   : > { %730 = vst [vmem:[%s1156_s19 + $0x50] sm:$0xff] %v698_v59  ;;  %746 = vst [vmem:[%s1156_s19 + $0xd0] sm:$0xff] %v714_v60  ;;  %v696_v63 = vadd.f32 %v1151_v24, %v593_v61  ;;  %v712_v0 = vadd.f32 %v1151_v24, %v657_v62 }
 0x101   : > { %v952_v1 = vpop.f32.mrf.mxu0  ;;  %v968_v2 = vpop.f32.mrf.mxu1 }
 0x102   : > { %728 = vst [vmem:[%s1156_s19 + $0x40] sm:$0xff] %v696_v63  ;;  %744 = vst [vmem:[%s1156_s19 + $0xc0] sm:$0xff] %v712_v0  ;;  %v699_v3 = vadd.f32 %v952_v1, %v1151_v24  ;;  %v715_v4 = vadd.f32 %v968_v2, %v1151_v24 }
 0x103   : > { %v596_v5 = vpop.f32.mrf.mxu0  ;;  %v660_v6 = vpop.f32.mrf.mxu1 }
 0x104   : > { %731 = vst [vmem:[%s1156_s19 + $0x58] sm:$0xff] %v699_v3  ;;  %747 = vst [vmem:[%s1156_s19 + $0xd8] sm:$0xff] %v715_v4  ;;  %v697_v7 = vadd.f32 %v1151_v24, %v596_v5  ;;  %v713_v8 = vadd.f32 %v1151_v24, %v660_v6 }
 0x105   : > { %v955_v9 = vpop.f32.mrf.mxu0  ;;  %v971_v10 = vpop.f32.mrf.mxu1 }
 0x106   : > { %729 = vst [vmem:[%s1156_s19 + $0x48] sm:$0xff] %v697_v7  ;;  %745 = vst [vmem:[%s1156_s19 + $0xc8] sm:$0xff] %v713_v8  ;;  %v702_v11 = vadd.f32 %v955_v9, %v1151_v24  ;;  %v718_v12 = vadd.f32 %v971_v10, %v1151_v24 }
 0x107   : > { %v609_v13 = vpop.f32.mrf.mxu0  ;;  %v673_v14 = vpop.f32.mrf.mxu1 }
 0x108   : > { %734 = vst [vmem:[%s1156_s19 + $0x70] sm:$0xff] %v702_v11  ;;  %750 = vst [vmem:[%s1156_s19 + $0xf0] sm:$0xff] %v718_v12  ;;  %v700_v15 = vadd.f32 %v1151_v24, %v609_v13  ;;  %v716_v16 = vadd.f32 %v1151_v24, %v673_v14 }
 0x109   : > { %v956_v17 = vpop.f32.mrf.mxu0  ;;  %v972_v18 = vpop.f32.mrf.mxu1 }
 0x10a   : > { %732 = vst [vmem:[%s1156_s19 + $0x60] sm:$0xff] %v700_v15  ;;  %748 = vst [vmem:[%s1156_s19 + $0xe0] sm:$0xff] %v716_v16  ;;  %v703_v19 = vadd.f32 %v956_v17, %v1151_v24  ;;  %v719_v20 = vadd.f32 %v972_v18, %v1151_v24 }
 0x10b   : > { %v612_v21 = vpop.f32.mrf.mxu0  ;;  %v676_v22 = vpop.f32.mrf.mxu1 }
 0x10c   : > { %735 = vst [vmem:[%s1156_s19 + $0x78] sm:$0xff] %v703_v19  ;;  %751 = vst [vmem:[%s1156_s19 + $0xf8] sm:$0xff] %v719_v20  ;;  %v701_v23 = vadd.f32 %v1151_v24, %v612_v21  ;;  %v717_v25 = vadd.f32 %v1151_v24, %v676_v22 }
 0x10e   : > { %733 = vst [vmem:[%s1156_s19 + $0x68] sm:$0xff] %v701_v23  ;;  %749 = vst [vmem:[%s1156_s19 + $0xe8] sm:$0xff] %v717_v25 }
 0x10f PF: > { %s13_s14 = sadd.s32 1, %s1059_s14   ;;  %s1235_s12 = smov %s1055_s13 }
 0x110   : > { %p10_p5 = scmp.ge.s32.totalorder %s13_s14, 4   ;;  %s1236_s13 = smov %s1238_s15 }
 0x112   :  { %12 = sbr.rel (!%p10_p5) target bundleno = 2 (0x2), region = 72 }

</bundles_post_ra>
